<compile_context>
chip_gen: v7x
topology: tpu7x:2x2x1
jax: 0.10.0
libtpu: 0.0.40
codegen_flags: <defaults>
</compile_context>

<pallas_src>
import functools

import jax
import jax.numpy as jnp
from jax.experimental import pallas as pl
from jax.experimental.pallas import tpu as pltpu


def _round_up(x, m):
    return (x + m - 1) // m * m


def vap_head_kernel(x_ref, w_ref, b_ref, o_ref, *, compute_dtype=None):
    # x_ref: (TM, D), w_ref: (D, N), b_ref: (1, N), o_ref: (TM, N)
    x = x_ref[...]
    w = w_ref[...]
    if compute_dtype is not None:
        # In-kernel VPU cast: free under the DMA/MXU, no extra HBM traffic.
        x = x.astype(compute_dtype)
        w = w.astype(compute_dtype)
    acc = jnp.dot(x, w, preferred_element_type=jnp.float32)
    o_ref[...] = (acc + b_ref[...]).astype(o_ref.dtype)


def vap_head_forward(x, w_t, bias, *, block_m=2048, compute_dtype=None,
                     out_dtype=None):
    """VAPHead('discrete') forward: y = x @ W^T + b.

    x: (B, T, D) ; w_t: (D, N) pre-transposed weight ; bias: (N,) -> (B, T, N)
    """
    B, T, D = x.shape
    Dw, N = w_t.shape
    assert D == Dw
    M = B * T
    if out_dtype is None:
        out_dtype = x.dtype

    x2d = x.reshape(M, D)
    b2d = bias.reshape(1, N).astype(jnp.float32)  # bias add stays f32

    # Sublane alignment for the tile: 8 rows for 4-byte, 16 for 2-byte (bf16
    # packs two rows per sublane), 32 for 1-byte dtypes. Use the narrowest
    # dtype touching the M axis (streamed x and the output).
    min_itemsize = min(
        jnp.dtype(x2d.dtype).itemsize,
        jnp.dtype(out_dtype).itemsize,
        jnp.dtype(compute_dtype).itemsize if compute_dtype is not None else 4,
    )
    align = 32 // min_itemsize

    tm = min(block_m, _round_up(M, align))
    n_tiles = pl.cdiv(M, tm)
    # Keep >= ~4 tiles when M is large enough so both v7x TensorCores get work.
    if n_tiles < 4 and M > 4 * align:
        tm = max(align, _round_up(pl.cdiv(M, 4), align))
        n_tiles = pl.cdiv(M, tm)

    x_item = jnp.dtype(x2d.dtype).itemsize
    w_item = jnp.dtype(w_t.dtype).itemsize
    o_item = jnp.dtype(out_dtype).itemsize

    # Advisory cost hint so XLA overlaps surrounding ops with this call.
    cost = pl.CostEstimate(
        flops=2 * M * D * N,
        bytes_accessed=M * D * x_item + D * N * w_item + N * 4 + M * N * o_item,
        transcendentals=0,
    )

    # VMEM footprint estimate (lane-padded; x tile (TM, 32) pads to 128 lanes).
    d_lanes = _round_up(D, 128)
    n_lanes = _round_up(N, 128)
    vmem_est = (2 * tm * (d_lanes * x_item + n_lanes * o_item)
                + d_lanes * n_lanes * w_item + 2 * n_lanes * 4)
    cp_kwargs = dict(dimension_semantics=("parallel",))
    if vmem_est > (16 << 20):  # above v5e's default scoped VMEM -> be explicit
        cp_kwargs["vmem_limit_bytes"] = min(vmem_est + (8 << 20), 64 << 20)

    kernel = functools.partial(vap_head_kernel, compute_dtype=compute_dtype)

    out2d = pl.pallas_call(
        kernel,
        out_shape=jax.ShapeDtypeStruct((M, N), out_dtype),
        grid=(n_tiles,),
        in_specs=[
            pl.BlockSpec((tm, D), lambda i: (i, 0)),   # streamed x tiles
            pl.BlockSpec((D, N), lambda i: (0, 0)),    # resident weight
            pl.BlockSpec((1, N), lambda i: (0, 0)),    # resident bias
        ],
        out_specs=pl.BlockSpec((tm, N), lambda i: (i, 0)),
        compiler_params=pltpu.CompilerParams(**cp_kwargs),
        cost_estimate=cost,
    )(x2d, w_t, b2d)

    return out2d.reshape(B, T, N)


if __name__ == "__main__":
    # Module config: input_dim=32, n_bins=4, type='discrete' -> 2**8 = 256 classes
    input_dim = 32
    n_bins = 4
    n_classes = 2 ** (2 * n_bins)  # 256

    B, T = 2, 8

    key = jax.random.PRNGKey(0)
    kx, kw, kb = jax.random.split(key, 3)

    # nn.Linear parameter shapes: W=(out, in), b=(out,)
    x = jax.random.normal(kx, (B, T, input_dim), dtype=jnp.float32)
    weight = jax.random.normal(kw, (n_classes, input_dim), dtype=jnp.float32) * 0.02
    bias = jax.random.normal(kb, (n_classes,), dtype=jnp.float32) * 0.01

    # Hoist the transpose (and any weight dtype lowering) out of the per-call
    # path -- done once at "init".
    w_t = jnp.asarray(weight.T)              # (D, N) f32
    w_t_bf16 = w_t.astype(jnp.bfloat16)      # resident weight, cast once

    y_ref = jnp.einsum("btd,nd->btn", x, weight) + bias

    # 1) f32 path (exact match to the reference).
    fwd = jax.jit(functools.partial(vap_head_forward, block_m=2048))
    y = jax.block_until_ready(fwd(x, w_t, bias))
    assert y.shape == (B, T, n_classes)
    assert y.dtype == jnp.float32
    assert jnp.allclose(y, y_ref, atol=1e-4, rtol=1e-4)

    # 2) bf16-output path (dominant HBM traffic halved; in-kernel bf16 compute,
    #    f32 accumulation + bias add).
    fwd_bf16 = jax.jit(functools.partial(
        vap_head_forward, block_m=2048,
        compute_dtype=jnp.bfloat16, out_dtype=jnp.bfloat16))
    y_bf16 = jax.block_until_ready(fwd_bf16(x, w_t_bf16, bias))
    assert y_bf16.shape == (B, T, n_classes)
    assert y_bf16.dtype == jnp.bfloat16
    assert jnp.allclose(y_bf16.astype(jnp.float32), y_ref, atol=2e-2, rtol=2e-2)

    # 3) Non-divisible M (masked partial last tile, no jnp.pad / slice).
    B2, T2 = 3, 5  # M = 15
    x_odd = jax.random.normal(kx, (B2, T2, input_dim), dtype=jnp.float32)
    y_odd = jax.block_until_ready(
        jax.jit(vap_head_forward)(x_odd, w_t, bias))
    y_odd_ref = jnp.einsum("btd,nd->btn", x_odd, weight) + bias
    assert y_odd.shape == (B2, T2, n_classes)
    assert jnp.allclose(y_odd, y_odd_ref, atol=1e-4, rtol=1e-4)

    print("KERNEL_OK")
</pallas_src>

<mosaic_0001>
module attributes {stable_mosaic.version = 11 : i64} {
  func.func @vap_head_kernel(%arg0: i32, %arg1: memref<16x32xf32, #tpu.memory_space<vmem>>, %arg2: memref<32x256xf32, #tpu.memory_space<vmem>>, %arg3: memref<1x256xf32, #tpu.memory_space<vmem>>, %arg4: memref<16x256xf32, #tpu.memory_space<vmem>>) attributes {dimension_semantics = [#tpu.dimension_semantics<parallel>], iteration_bounds = array<i64: 1>, scalar_prefetch = 0 : i64, scratch_operands = 0 : i64, tpu.core_type = #tpu.core_type<tc>, window_params = [{transform_indices = @transform_0, window_bounds = array<i64: 16, 32>}, {pipeline_mode = #tpu.pipeline_mode<synchronous>, transform_indices = @transform_1, window_bounds = array<i64: 32, 256>}, {pipeline_mode = #tpu.pipeline_mode<synchronous>, transform_indices = @transform_2, window_bounds = array<i64: 1, 256>}, {transform_indices = @transform_3, window_bounds = array<i64: 16, 256>}]} {
    %c0 = arith.constant 0 : index
    %c0_0 = arith.constant 0 : index
    %0 = vector.load %arg1[%c0, %c0_0] : memref<16x32xf32, #tpu.memory_space<vmem>>, vector<16x32xf32>
    %c0_1 = arith.constant 0 : index
    %c0_2 = arith.constant 0 : index
    %1 = vector.load %arg2[%c0_1, %c0_2] : memref<32x256xf32, #tpu.memory_space<vmem>>, vector<32x256xf32>
    %cst = arith.constant dense<0.000000e+00> : vector<16x256xf32>
    %2 = tpu.matmul %0, %1, %cst {dimension_numbers = #tpu.dot_dimension_numbers<[1], [0], [0], [1], [0, 0, 1, 1], [], []>} : vector<16x32xf32>, vector<32x256xf32>, vector<16x256xf32> -> vector<16x256xf32>
    %c0_3 = arith.constant 0 : index
    %c0_4 = arith.constant 0 : index
    %3 = vector.load %arg3[%c0_3, %c0_4] : memref<1x256xf32, #tpu.memory_space<vmem>>, vector<1x256xf32>
    %4 = vector.broadcast %3 : vector<1x256xf32> to vector<16x256xf32>
    %5 = arith.addf %2, %4 : vector<16x256xf32>
    %c0_5 = arith.constant 0 : index
    %c0_6 = arith.constant 0 : index
    %6 = vector.load %arg4[%c0_5, %c0_6] : memref<16x256xf32, #tpu.memory_space<vmem>>, vector<16x256xf32>
    tpu.vector_store %arg4[%c0_5, %c0_6], %5 {strides = array<i32>} : memref<16x256xf32, #tpu.memory_space<vmem>>, vector<16x256xf32>,
    return
  }
  func.func @transform_0(%arg0: i32) -> (i32, i32) {
    %c0_i32 = arith.constant 0 : i32
    %c0_i32_0 = arith.constant 0 : i32
    return %arg0, %c0_i32 : i32, i32
  }
  func.func @transform_1(%arg0: i32) -> (i32, i32) {
    %c0_i32 = arith.constant 0 : i32
    %c0_i32_0 = arith.constant 0 : i32
    %c0_i32_1 = arith.constant 0 : i32
    return %c0_i32, %c0_i32_0 : i32, i32
  }
  func.func @transform_2(%arg0: i32) -> (i32, i32) {
    %c0_i32 = arith.constant 0 : i32
    %c0_i32_0 = arith.constant 0 : i32
    %c0_i32_1 = arith.constant 0 : i32
    return %c0_i32, %c0_i32_0 : i32, i32
  }
  func.func @transform_3(%arg0: i32) -> (i32, i32) {
    %c0_i32 = arith.constant 0 : i32
    %c0_i32_0 = arith.constant 0 : i32
    return %arg0, %c0_i32 : i32, i32
  }
}

</mosaic_0001>

<bundles_post_ra>
// kernel: vap_head_forward.1
= control target key start
LH: loop header
LB: loop body
LE: loop exit
PB: predicated region body
PF: predicated region fallthrough
CT: control target
= control target key end

     0   :  { %8 = vsyncpa [#allocation3], 0  ;;  %s338_s0 = inlined_call_operand.hbm [shape: f32[16,32], index: 0, kind: input, shape index: {}]   ;;  %s339_s1 = inlined_call_operand.hbm [shape: f32[32,256], index: 1, kind: input, shape index: {}]   ;;  %s340_s2 = inlined_call_operand.vmem [shape: f32[1,256], index: 2, kind: input, shape index: {}]   ;;  %s341_s3 = inlined_call_operand.hbm [shape: f32[16,256], index: 3, kind: output, shape index: {}]  }
   0x1   :  { %9 = vsyncpa [#allocation6], 0 }
   0x2   :  { %10 = vsyncpa [#allocation4], 0  ;;  %s265_s12 = smov [#allocation2]   ;;  %s193_s16 = scalar_lea.hbm %s338_s0, 256 }
   0x3   :  { %s16_s13 = sshll.u32 %s265_s12, 4  ;;  %p194_p0 = scmp.ne.s32.totalorder %s338_s0, %s193_s16  ;;  %s17_s13 = int_to_ptr.vmem [resolvable:$true] %s16_s13 }
   0x4   :  { %p197_p1 = scmp.lt.u32.totalorder %s193_s16, %s338_s0 }
   0x6   :  { %p199_p2 = pnand %p197_p1, %p194_p0 }
   0x8   :  { %202 = shalt.err (!%p199_p2)
}
   0x9   :  { %s203_s21 = scalar_lea.vmem %s17_s13, 256  ;;  %p208_p4 = scmp.lt.s32.totalorder %s17_s13, %s17_s13 }
   0xa   :  { %p204_p3 = scmp.ne.s32.totalorder %s17_s13, %s203_s21  ;;  %p209_p5 = scmp.lt.s32.totalorder %s203_s21, %s203_s21 }
   0xc   :  { %p210_p6 = por %p209_p5, %p208_p4 }
   0xe   :  { %p211_p7 = pnand %p210_p6, %p204_p3 }
  0x10   :  { %214 = shalt.err (!%p211_p7)
}
  0x11   :  { %s266_s22 = smov 128   ;;  %s267_s23 = smov 8  }
  0x12   :  { %22 = dma.hbm_to_vmem [thread:$0]  %s338_s0, 256, %s17_s13, [#allocation3], %s266_s22, %s266_s22, %s267_s23  }
  0x13   :  { %s268_s26 = smov [#allocation5]   ;;  %s215_s30 = scalar_lea.hbm %s339_s1, 1024 }
  0x14   :  { %s28_s27 = sshll.u32 %s268_s26, 4  ;;  %p216_p8 = scmp.ne.s32.totalorder %s339_s1, %s215_s30  ;;  %s29_s27 = int_to_ptr.vmem [resolvable:$true] %s28_s27 }
  0x15   :  { %p219_p9 = scmp.lt.u32.totalorder %s215_s30, %s339_s1 }
  0x17   :  { %p221_p10 = pnand %p219_p9, %p216_p8 }
  0x19   :  { %224 = shalt.err (!%p221_p10)
}
  0x1a   :  { %s225_s8 = scalar_lea.vmem %s29_s27, 1024  ;;  %p230_p12 = scmp.lt.s32.totalorder %s29_s27, %s29_s27 }
  0x1b   :  { %p226_p11 = scmp.ne.s32.totalorder %s29_s27, %s225_s8  ;;  %p231_p13 = scmp.lt.s32.totalorder %s225_s8, %s225_s8 }
  0x1d   :  { %p232_p0 = por %p231_p13, %p230_p12 }
  0x1f   :  { %p233_p1 = pnand %p232_p0, %p226_p11 }
  0x21   :  { %236 = shalt.err (!%p233_p1)
}
  0x22   :  { %s269_s0 = smov 256   ;;  %s270_s9 = smov 16  }
  0x23   :  { %34 = dma.hbm_to_vmem [thread:$0]  %s339_s1, 1024, %s29_s27, [#allocation6], %s269_s0, %s269_s0, %s270_s9  }
  0x24   :  { %259 = dma.done.wait [#allocation3], 256  }
  0x25   :  { %260 = vsyncadd [#allocation3], 4294967040 }
  0x26   :  { %261 = dma.done.wait [#allocation6], 1024  }
  0x27   :  { %262 = vsyncadd [#allocation6], 4294966272  ;;  %v271_v0 = vmov 0.0   ;;  %v46_v1 = vld [vmem:[#allocation5 + $0x8] sm:$0xff]  ;;  %v48_v2 = vld [vmem:[#allocation5 + $0x18] sm:$0xff]  ;;  %vm65_vm0 = vcmask 261120   ;;  %v55_v15 = vlaneseq }
  0x28   :  { %136 = vmatprep.mubr.f32.mxu0 %v271_v0  ;;  %142 = vmatprep.mubr.f32.mxu1 %v271_v0  ;;  %v45_v3 = vld [vmem:[#allocation5] sm:$0xff]  ;;  %v173_v4 = vpack.c.bf16 %v48_v2, %v46_v1  ;;  %v47_v5 = vld [vmem:[#allocation5 + $0x10] sm:$0xff]  ;;  %v50_v6 = vld [vmem:[#allocation5 + $0x28] sm:$0xff]  ;;  %s272_s13 = smov [#allocation7]  }
  0x29   :  { %v52_v7 = vld [vmem:[#allocation5 + $0x38] sm:$0xff]  ;;  %v175_v8 = vpack.c.bf16 %v47_v5, %v45_v3  ;;  %v49_v10 = vld [vmem:[#allocation5 + $0x20] sm:$0xff]  ;;  %v51_v11 = vld [vmem:[#allocation5 + $0x30] sm:$0xff]  ;;  %v56_v16 = vshrl.u32 %v55_v15, 7  ;;  %s158_s14 = sshll.u32 %s272_s13, 4  ;;  %s159_s14 = int_to_ptr.vmem [resolvable:$true] %s158_s14 }
  0x2a   :  { %v177_v9 = vpack.c.bf16 %v52_v7, %v50_v6  ;;  %174 = vmatprep.subr.bf16.mxu0 %v173_v4  ;;  %181 = vmatprep.subr.bf16.mxu1 %v173_v4  ;;  %v179_v12 = vpack.c.bf16 %v51_v11, %v49_v10  ;;  %v43_v13 = vld [vmem:[#allocation2] sm:$0xff]  ;;  %v44_v14 = vld [vmem:[#allocation2 + $0x8] sm:$0xff]  ;;  %s237_s15 = scalar_lea.vmem %s159_s14, 512  ;;  %p242_p3 = scmp.lt.s32.totalorder %s159_s14, %s159_s14 }
  0x2b   :  { %176 = vmatpush1.bf16.msra.mxu0 %v175_v8  ;;  %183 = vmatpush1.bf16.msra.mxu1 %v175_v8  ;;  %v57_v17 = vsub.s32 0, %v56_v16  ;;  %v53_v18 = vld [vmem:[%s340_s2] sm:$0x3]  ;;  %v61_v19 = vsub.s32 1, %v56_v16  ;;  %p238_p2 = scmp.ne.s32.totalorder %s159_s14, %s237_s15  ;;  %p243_p4 = scmp.lt.s32.totalorder %s237_s15, %s237_s15 }
  0x2c   :  { %178 = vmatprep.subr.bf16.mxu0 %v177_v9  ;;  %182 = vmatprep.subr.bf16.mxu1 %v177_v9 }
  0x2d   :  { %v58_v20 = vrot.slane %v53_v18, %v57_v17  ;;  %v62_v21 = vrot.slane %v53_v18, %v61_v19  ;;  %p244_p5 = por %p243_p4, %p242_p3 }
  0x2f   :  { %180 = vmatpush1.bf16.msra.mxu0 %v179_v12  ;;  %184 = vmatpush1.bf16.msra.mxu1 %v179_v12  ;;  %p245_p6 = pnand %p244_p5, %p238_p2 }
  0x32   :  { %171 = vmatmul.mubr.msk.f32.vlgmr.msra.gmra.mrb[0].mxu0 %vm65_vm0, %v43_v13  ;;  %172 = vmatmul.mubr.msk.f32.vlgmr.msra.gmra.mrb[0].mxu1 %vm65_vm0, %v44_v14 }
 0x105   :  { %v138_v22 = vpop.f32.mrb[0].mxu0  ;;  %v144_v23 = vpop.f32.mrb[0].mxu1 }
 0x106   :  { %v139_v24 = vadd.f32 %v138_v22, %v58_v20  ;;  %v145_v25 = vadd.f32 %v144_v23, %v58_v20  ;;  %v140_v26 = vpop.f32.mrb[1].mxu0  ;;  %v146_v27 = vpop.f32.mrb[1].mxu1 }
 0x107   :  { %v141_v28 = vadd.f32 %v140_v26, %v62_v21  ;;  %v147_v29 = vadd.f32 %v146_v27, %v62_v21 }
 0x108   :  { %149 = vst [vmem:[#allocation7] sm:$0xff] %v139_v24  ;;  %151 = vst [vmem:[#allocation7 + $0x10] sm:$0xff] %v145_v25 }
 0x109   :  { %150 = vst [vmem:[#allocation7 + $0x8] sm:$0xff] %v141_v28  ;;  %152 = vst [vmem:[#allocation7 + $0x18] sm:$0xff] %v147_v29 }
 0x10a   :  { %248 = shalt.err (!%p245_p6)
}
 0x10b   :  { %s249_s17 = scalar_lea.hbm %s341_s3, 512 }
 0x10c   :  { %p250_p7 = scmp.ne.s32.totalorder %s341_s3, %s249_s17  ;;  %p253_p8 = scmp.lt.u32.totalorder %s249_s17, %s341_s3 }
 0x10e   :  { %p255_p9 = pnand %p253_p8, %p250_p7 }
 0x110   :  { %258 = shalt.err (!%p255_p9)
}
 0x111   :  { %164 = dma.vmem_to_hbm [thread:$0]  %s159_s14, 512, %s341_s3, [#allocation4], %s269_s0, %s269_s0, %s270_s9  }
 0x112   :  { %263 = dma.done.wait [#allocation4], 512  }
 0x113   :  { %264 = vsyncadd [#allocation4], 4294966784 }
 0x114   :  { %168 = vsyncpa [#allocation3], 1 }
 0x115   :  { %169 = vsyncpa [#allocation6], 1 }
 0x116   :  { %170 = vsyncpa [#allocation4], 1 }

</bundles_post_ra>
